<compile_context>
chip_gen: v6e
topology: v6e:2x2x1
jax: 0.10.0
libtpu: 0.0.40
codegen_flags: <defaults>
</compile_context>

<pallas_src>
import functools

import jax
import jax.numpy as jnp
from jax.experimental import pallas as pl
from jax.experimental.pallas import tpu as pltpu

_BLOCK_BYTES = 2 * 1024 * 1024       # per in/out VMEM buffer (~85% HBM-roofline knee)
_MIN_SPLIT_BYTES = 1 * 1024 * 1024   # arrays above this never run as one grid step
_MIN_GRID_STEPS = 4                  # pipelining + dual-TC (v7x) headroom
_LANE_CANDIDATES = (8192, 4096, 2048, 1024, 512, 256, 128)


def _native_bf16_ok():
    """bf16 VPU math exists on v6e and later; widen to f32 on older chips."""
    try:
        kind = jax.devices()[0].device_kind.lower()
    except Exception:  # pragma: no cover - be conservative
        return False
    return not any(t in kind for t in ("v2", "v3", "v4", "v5"))


def _flip_sign_where_negative(a, x):
    """out = -a where x < 0 else a.

    For f32 this is a 2-VALU-op bitwise flip of a's sign bit with x's sign bit
    (bitcasts are free).  Only observable difference vs. the select form is the
    sign of zero for a -0.0 input, which the reference treats as positive.
    """
    if a.dtype == jnp.float32 and x.dtype == jnp.float32:
        sign = pltpu.bitcast(x, jnp.uint32) & jnp.uint32(0x80000000)
        return pltpu.bitcast(pltpu.bitcast(a, jnp.uint32) ^ sign, jnp.float32)
    return jnp.where(x < 0, -a, a)


def _two_sided_leaky_threshold_kernel(params_ref, x_ref, o_ref, *,
                                      has_ceil, has_floor, zero_slope,
                                      compute_dtype):
    # params_ref (SMEM, f32): [x0, 1/(x1-x0), ceil, negative_slope]
    x = x_ref[...]
    if x.dtype != compute_dtype:
        x = x.astype(compute_dtype)
    x0 = params_ref[0].astype(compute_dtype)
    inv_scale = params_ref[1].astype(compute_dtype)
    ceil_v = params_ref[2].astype(compute_dtype)
    slope = params_ref[3].astype(compute_dtype)

    a = (jnp.abs(x) - x0) * inv_scale
    if zero_slope:
        # leaky_relu with slope 0 is a plain clamp: fuse to min/max.
        if has_ceil:
            a = jnp.minimum(a, ceil_v)
        if has_floor:
            a = jnp.maximum(a, 0.0)
    else:
        if has_ceil:
            # -1 * (leaky_relu(ceil - a) - ceil)  ==  ceil - leaky_relu(ceil - a)
            t = ceil_v - a
            a = ceil_v - jnp.where(t >= 0, t, slope * t)
        if has_floor:
            a = jnp.where(a >= 0, a, slope * a)

    out = _flip_sign_where_negative(a, x)
    o_ref[...] = out.astype(o_ref.dtype)


def _as_2d(x):
    """2-D (rows, lanes) view with rows*lanes == x.size (never pads)."""
    shape = x.shape
    n = int(x.size)
    if x.ndim >= 2 and shape[-1] % 128 == 0:
        # Natural collapse keeps the native lane dim: lane-dense and layout
        # friendly (usually a free reshape of a contiguous array).
        return x.reshape(-1, shape[-1])
    # Fully flatten to a wide lane-dense slab when the element count allows;
    # prefer the widest lane count that still gives >= 8 rows (full sublanes).
    for w in _LANE_CANDIDATES:
        if n % w == 0 and n // w >= 8:
            return x.reshape(-1, w)
    for w in _LANE_CANDIDATES:
        if n % w == 0:
            return x.reshape(-1, w)
    # Ragged element count: collapse leading dims only (free view, no padding
    # copy, no trailing slice).  Pallas masks the partial trailing vregs.
    if x.ndim >= 2:
        return x.reshape(-1, shape[-1])
    return x.reshape(1, -1)


def _pick_blocks(rows, lanes, itemsize):
    """Byte-budgeted (bm, bn) block shape with multi-step-grid guarantee."""
    pack = max(8, 32 // itemsize)      # sublane packing: 8 / 16 / 32 rows
    # Lane-dim block: full extent unless enormous.
    bn_cap = max(128, (_BLOCK_BYTES // (itemsize * pack)) // 128 * 128)
    bn = lanes if lanes <= bn_cap else bn_cap
    # Row-dim block from the byte budget (not an element count).
    bm_cap = max(pack, (_BLOCK_BYTES // (itemsize * bn)) // pack * pack)
    bm = rows if rows <= bm_cap else bm_cap
    # Guarantee >= _MIN_GRID_STEPS blocks for >1 MiB arrays so DMA-in /
    # compute / DMA-out overlap and both v7x TensorCores get work.
    total_bytes = rows * lanes * itemsize
    if total_bytes > _MIN_SPLIT_BYTES:
        steps = pl.cdiv(rows, bm) * pl.cdiv(lanes, bn)
        if steps < _MIN_GRID_STEPS:
            if rows >= _MIN_GRID_STEPS * pack:
                bm = max(pack, (rows // _MIN_GRID_STEPS) // pack * pack)
            elif bn == lanes and lanes >= _MIN_GRID_STEPS * 128:
                bn = max(128, (lanes // _MIN_GRID_STEPS) // 128 * 128)
    return bm, bn


def two_sided_leaky_threshold(x, *, x0, x1, floor=0, ceil=None,
                              negative_slope=0.0):
    """Pallas implementation of TwoSidedLeakyThreshold.forward."""
    orig_shape = x.shape
    dtype = x.dtype
    x2d = _as_2d(x)
    rows, lanes = x2d.shape
    itemsize = jnp.dtype(dtype).itemsize
    bm, bn = _pick_blocks(rows, lanes, itemsize)
    grid = (pl.cdiv(rows, bm), pl.cdiv(lanes, bn))

    compute_dtype = jnp.float32
    if dtype == jnp.bfloat16 and _native_bf16_ok():
        compute_dtype = jnp.bfloat16

    # Structural flags are compile-time; numeric values ride in SMEM so new
    # parameter values do not force a recompile.
    zero_slope = (isinstance(negative_slope, (int, float))
                  and float(negative_slope) == 0.0)
    # NOTE: like the PyTorch module, only `floor is not None` matters; its
    # numeric value (default 0) is never used by forward().
    params = jnp.stack([
        jnp.asarray(x0, jnp.float32),
        1.0 / (jnp.asarray(x1, jnp.float32) - jnp.asarray(x0, jnp.float32)),
        jnp.asarray(0.0 if ceil is None else ceil, jnp.float32),
        jnp.asarray(negative_slope, jnp.float32),
    ])

    kernel = functools.partial(
        _two_sided_leaky_threshold_kernel,
        has_ceil=ceil is not None,
        has_floor=floor is not None,
        zero_slope=zero_slope,
        compute_dtype=compute_dtype)

    out2d = pl.pallas_call(
        kernel,
        out_shape=jax.ShapeDtypeStruct((rows, lanes), dtype),
        grid=grid,
        in_specs=[
            pl.BlockSpec(memory_space=pltpu.MemorySpace.SMEM),   # params
            pl.BlockSpec((bm, bn), lambda i, j: (i, j)),         # x tile
        ],
        out_specs=pl.BlockSpec((bm, bn), lambda i, j: (i, j)),
        compiler_params=pltpu.CompilerParams(
            dimension_semantics=("parallel", "parallel"),
            vmem_limit_bytes=32 * 1024 * 1024),
    )(params, x2d)

    return out2d.reshape(orig_shape)


def _reference(x, *, x0, x1, floor=0, ceil=None, negative_slope=0.0):
    """Pure-JAX reference mirroring the PyTorch module."""
    x = x.astype(jnp.float32)
    neg = (x < 0).astype(jnp.float32)
    a = jnp.abs(x)
    a = (a - x0) * (1.0 / (x1 - x0))

    def lrelu(v):
        return jnp.where(v >= 0, v, negative_slope * v)

    if ceil is not None:
        a = -1.0 * (lrelu(-a + ceil) - ceil)
    if floor is not None:
        a = lrelu(a)
    return a * (-2.0 * neg + 1.0)


if __name__ == "__main__":
    key = jax.random.PRNGKey(0)
    # NCHW input, small shape consistent with a conv-activation use.
    x = jax.random.normal(key, (2, 4, 16, 16), dtype=jnp.float32) * 2.0

    x0, x1, floor, ceil = 0.25, 1.5, 0, 1.0
    slope = 0.01

    out = jax.block_until_ready(two_sided_leaky_threshold(
        x, x0=x0, x1=x1, floor=floor, ceil=ceil, negative_slope=slope))
    ref = _reference(x, x0=x0, x1=x1, floor=floor, ceil=ceil,
                     negative_slope=slope)
    assert out.shape == x.shape and out.dtype == x.dtype
    assert jnp.allclose(out, ref, atol=1e-5, rtol=1e-5), "mismatch (general path)"

    # Default module config (ceil=None, negative_slope=0) -> fused clamp path.
    out2 = jax.block_until_ready(two_sided_leaky_threshold(x, x0=x0, x1=x1))
    assert jnp.allclose(out2, _reference(x, x0=x0, x1=x1),
                        atol=1e-5, rtol=1e-5), "mismatch (default path)"

    # Ragged element count: exercises the no-pad fallback (collapse onto the
    # native last dim, masked partial lanes) — no concatenate / slice passes.
    x_odd = jax.random.normal(jax.random.PRNGKey(1), (3, 5, 7, 9),
                              dtype=jnp.float32) * 2.0
    out3 = jax.block_until_ready(two_sided_leaky_threshold(
        x_odd, x0=x0, x1=x1, floor=floor, ceil=ceil, negative_slope=slope))
    ref3 = _reference(x_odd, x0=x0, x1=x1, floor=floor, ceil=ceil,
                      negative_slope=slope)
    assert out3.shape == x_odd.shape
    assert jnp.allclose(out3, ref3, atol=1e-5, rtol=1e-5), "mismatch (ragged path)"

    # Moderate size (>1 MiB): exercises the multi-step grid (pipelined /
    # dual-TC) and a ragged trailing row-block.
    x_big = jax.random.normal(jax.random.PRNGKey(2), (2, 16, 96, 96),
                              dtype=jnp.float32)
    out4 = jax.block_until_ready(two_sided_leaky_threshold(
        x_big, x0=x0, x1=x1, floor=floor, ceil=ceil))
    ref4 = _reference(x_big, x0=x0, x1=x1, floor=floor, ceil=ceil)
    assert jnp.allclose(out4, ref4, atol=1e-5, rtol=1e-5), "mismatch (multi-step)"

    # bf16 path: native bf16 math on v6e+/v7x, f32 widen on v5e and older.
    xb = x.astype(jnp.bfloat16)
    out5 = jax.block_until_ready(two_sided_leaky_threshold(
        xb, x0=x0, x1=x1, floor=floor, ceil=ceil, negative_slope=slope))
    ref5 = _reference(xb, x0=x0, x1=x1, floor=floor, ceil=ceil,
                      negative_slope=slope)
    assert out5.dtype == jnp.bfloat16
    assert jnp.allclose(out5.astype(jnp.float32), ref5,
                        atol=5e-2, rtol=5e-2), "mismatch (bf16 path)"

    print("KERNEL_OK")
</pallas_src>

<mosaic_0001>
module attributes {stable_mosaic.version = 11 : i64} {
  func.func @_two_sided_leaky_threshold_kernel(%arg0: i32, %arg1: i32, %arg2: memref<4xf32, #tpu.memory_space<smem>>, %arg3: memref<8x256xf32, #tpu.memory_space<vmem>>, %arg4: memref<8x256xf32, #tpu.memory_space<vmem>>) attributes {dimension_semantics = [#tpu.dimension_semantics<parallel>, #tpu.dimension_semantics<parallel>], iteration_bounds = array<i64: 1, 1>, scalar_prefetch = 0 : i64, scratch_operands = 0 : i64, tpu.core_type = #tpu.core_type<tc>, window_params = [{transform_indices = @transform_0, window_bounds = array<i64: 4>}, {transform_indices = @transform_1, window_bounds = array<i64: 8, 256>}, {transform_indices = @transform_2, window_bounds = array<i64: 8, 256>}]} {
    %c0 = arith.constant 0 : index
    %c0_0 = arith.constant 0 : index
    %0 = vector.load %arg3[%c0, %c0_0] : memref<8x256xf32, #tpu.memory_space<vmem>>, vector<8x256xf32>
    %c0_1 = arith.constant 0 : index
    %1 = memref.load %arg2[%c0_1] : memref<4xf32, #tpu.memory_space<smem>>
    %c1 = arith.constant 1 : index
    %2 = memref.load %arg2[%c1] : memref<4xf32, #tpu.memory_space<smem>>
    %c2 = arith.constant 2 : index
    %3 = memref.load %arg2[%c2] : memref<4xf32, #tpu.memory_space<smem>>
    %c3 = arith.constant 3 : index
    %4 = memref.load %arg2[%c3] : memref<4xf32, #tpu.memory_space<smem>>
    %5 = math.absf %0 : vector<8x256xf32>
    %6 = vector.broadcast %1 : f32 to vector<8x256xf32>
    %7 = arith.subf %5, %6 : vector<8x256xf32>
    %8 = vector.broadcast %2 : f32 to vector<8x256xf32>
    %9 = arith.mulf %7, %8 : vector<8x256xf32>
    %10 = vector.broadcast %3 : f32 to vector<8x256xf32>
    %11 = arith.subf %10, %9 : vector<8x256xf32>
    %cst = arith.constant 0.000000e+00 : f32
    %12 = vector.broadcast %cst : f32 to vector<8x256xf32>
    %13 = arith.cmpf oge, %11, %12 : vector<8x256xf32>
    %14 = vector.broadcast %4 : f32 to vector<8x256xf32>
    %15 = arith.mulf %14, %11 : vector<8x256xf32>
    %16 = arith.select %13, %11, %15 : vector<8x256xi1>, vector<8x256xf32>
    %17 = vector.broadcast %3 : f32 to vector<8x256xf32>
    %18 = arith.subf %17, %16 : vector<8x256xf32>
    %cst_2 = arith.constant 0.000000e+00 : f32
    %19 = vector.broadcast %cst_2 : f32 to vector<8x256xf32>
    %20 = arith.cmpf oge, %18, %19 : vector<8x256xf32>
    %21 = vector.broadcast %4 : f32 to vector<8x256xf32>
    %22 = arith.mulf %21, %18 : vector<8x256xf32>
    %23 = arith.select %20, %18, %22 : vector<8x256xi1>, vector<8x256xf32>
    %24 = tpu.bitcast %0 : vector<8x256xf32> -> vector<8x256xi32>
    %c-2147483648_i32 = arith.constant -2147483648 : i32
    %25 = vector.broadcast %c-2147483648_i32 : i32 to vector<8x256xi32>
    %26 = arith.andi %24, %25 : vector<8x256xi32>
    %27 = tpu.bitcast %23 : vector<8x256xf32> -> vector<8x256xi32>
    %28 = arith.xori %27, %26 : vector<8x256xi32>
    %29 = tpu.bitcast %28 : vector<8x256xi32> -> vector<8x256xf32>
    %c0_3 = arith.constant 0 : index
    %c0_4 = arith.constant 0 : index
    %30 = vector.load %arg4[%c0_3, %c0_4] : memref<8x256xf32, #tpu.memory_space<vmem>>, vector<8x256xf32>
    tpu.vector_store %arg4[%c0_3, %c0_4], %29 {strides = array<i32>} : memref<8x256xf32, #tpu.memory_space<vmem>>, vector<8x256xf32>,
    return
  }
  func.func @transform_0(%arg0: i32, %arg1: i32) -> i32 {
    %c0_i32 = arith.constant 0 : i32
    %c0_i32_0 = arith.constant 0 : i32
    return %c0_i32 : i32
  }
  func.func @transform_1(%arg0: i32, %arg1: i32) -> (i32, i32) {
    %c0_i32 = arith.constant 0 : i32
    return %arg0, %arg1 : i32, i32
  }
  func.func @transform_2(%arg0: i32, %arg1: i32) -> (i32, i32) {
    %c0_i32 = arith.constant 0 : i32
    return %arg0, %arg1 : i32, i32
  }
}

</mosaic_0001>

<bundles_post_ra>
// kernel: tpu_custom_call.1
= control target key start
LH: loop header
LB: loop body
LE: loop exit
PB: predicated region body
PF: predicated region fallthrough
CT: control target
= control target key end

     0   :  { %7 = vsyncpa [#allocation5], 0  ;;  %s182_s0 = inlined_call_operand.hbm [shape: f32[4], index: 0, kind: input, shape index: {}]   ;;  %s183_s1 = inlined_call_operand.hbm [shape: f32[8,256], index: 1, kind: input, shape index: {}]   ;;  %s184_s2 = inlined_call_operand.hbm [shape: f32[8,256], index: 2, kind: output, shape index: {}]  }
   0x1   :  { %8 = vsyncpa [#allocation3], 0 }
   0x2   :  { %9 = vsyncpa [#allocation4], 0  ;;  %s155_s9 = smov [#allocation2]   ;;  %s156_s12 = smov [#allocation6]  }
   0x3   :  { %17 = dma.hbm_to_smem %s182_s0, 16, %s155_s9, [#allocation5]  }
   0x4   :  { %s24_s13 = sshll.u32 %s156_s12, 4  ;;  %s25_s13 = int_to_ptr.vmem [resolvable:$true] %s24_s13 }
   0x5   :  { %s117_s14 = scalar_lea.vmem %s25_s13, 256  ;;  %p122_p1 = scmp.lt.s32.totalorder %s25_s13, %s25_s13 }
   0x6   :  { %p118_p0 = scmp.ne.s32.totalorder %s25_s13, %s117_s14  ;;  %p123_p2 = scmp.lt.s32.totalorder %s117_s14, %s117_s14 }
   0x8   :  { %p124_p3 = por %p123_p2, %p122_p1 }
   0xa   :  { %p125_p4 = pnand %p124_p3, %p118_p0 }
   0xc   :  { %128 = shalt.err (!%p125_p4)
}
   0xd   :  { %27 = dma.hbm_to_vmem [thread:$0]  %s183_s1, 256, %s25_s13, [#allocation3]  }
   0xe   :  { %149 = dma.done.wait [#allocation5], 16  }
   0xf   :  { %150 = vsyncadd [#allocation5], 4294967280 }
  0x10   :  { %151 = dma.done.wait [#allocation3], 256  }
  0x11   :  { %152 = vsyncadd [#allocation3], 4294967040 }
  0x12   :  { %34 = sfence }
  0x13   :  { %v35_v0 = vld [vmem:[#allocation6] sm:$0xff]  ;;  %s37_s0 = sld [smem:[#allocation2]]  ;;  %v36_v1 = vld [vmem:[#allocation6 + $0x8] sm:$0xff]  ;;  %s157_s1 = smov [#allocation7]  }
  0x14   :  { %s95_s17 = sld [smem:[#allocation2 + $0x1]]  ;;  %v41_v2 = vand.u32 2147483647, %v35_v0  ;;  %v42_v3 = vand.u32 2147483647, %v36_v1  ;;  %v69_v20 = vand.u32 2147483648, %v35_v0 }
  0x15   :  { %s96_s18 = sld [smem:[#allocation2 + $0x2]]  ;;  %v70_v21 = vand.u32 2147483648, %v36_v1  ;;  %s85_s20 = sshll.u32 %s157_s1, 4  ;;  %s86_s20 = int_to_ptr.vmem [resolvable:$true] %s85_s20 }
  0x16   :  { %s97_s19 = sld [smem:[#allocation2 + $0x3]]  ;;  %s129_s21 = scalar_lea.vmem %s86_s20, 256 }
  0x17   :  { %p130_p5 = scmp.ne.s32.totalorder %s86_s20, %s129_s21  ;;  %p134_p6 = scmp.lt.s32.totalorder %s86_s20, %s86_s20 }
  0x18   :  { %p135_p7 = scmp.lt.s32.totalorder %s129_s21, %s129_s21 }
  0x19   :  { %v43_v4 = vstv %s37_s0 }
  0x1a   :  { %v44_v5 = vsub.f32 %v41_v2, %v43_v4  ;;  %v46_v6 = vstv %s95_s17  ;;  %v45_v7 = vsub.f32 %v42_v3, %v43_v4  ;;  %p136_p8 = por %p135_p7, %p134_p6 }
  0x1b   :  { %v49_v8 = vstv %s96_s18 }
  0x1c   :  { %v47_v9 = vmul.f32 %v46_v6, %v44_v5  ;;  %v48_v10 = vmul.f32 %v46_v6, %v45_v7  ;;  %v54_v11 = vstv %s97_s19  ;;  %p137_p9 = pnand %p136_p8, %p130_p5 }
  0x1e   :  { %v50_v12 = vsub.f32 %v49_v8, %v47_v9  ;;  %v51_v13 = vsub.f32 %v49_v8, %v48_v10 }
  0x20   :  { %vm52_vm0 = vcmp.ge.f32.partialorder %v50_v12, 0.0  ;;  %v55_v14 = vmul.f32 %v54_v11, %v50_v12  ;;  %vm53_vm1 = vcmp.ge.f32.partialorder %v51_v13, 0.0  ;;  %v56_v15 = vmul.f32 %v54_v11, %v51_v13 }
  0x22   :  { %v57_v16 = vsel %vm52_vm0, %v50_v12, %v55_v14  ;;  %v58_v17 = vsel %vm53_vm1, %v51_v13, %v56_v15 }
  0x23   :  { %v59_v18 = vsub.f32 %v49_v8, %v57_v16  ;;  %v60_v19 = vsub.f32 %v49_v8, %v58_v17 }
  0x25   :  { %vm61_vm2 = vcmp.ge.f32.partialorder %v59_v18, 0.0  ;;  %v63_v22 = vmul.f32 %v59_v18, %v54_v11  ;;  %vm62_vm3 = vcmp.ge.f32.partialorder %v60_v19, 0.0  ;;  %v64_v23 = vmul.f32 %v60_v19, %v54_v11 }
  0x27   :  { %v65_v24 = vsel %vm61_vm2, %v59_v18, %v63_v22  ;;  %v66_v25 = vsel %vm62_vm3, %v60_v19, %v64_v23 }
  0x28   :  { %v73_v26 = vxor.u32 %v69_v20, %v65_v24  ;;  %v74_v27 = vxor.u32 %v70_v21, %v66_v25 }
  0x2a   :  { %77 = vst [vmem:[#allocation7] sm:$0xff] %v73_v26  ;;  %78 = vst [vmem:[#allocation7 + $0x8] sm:$0xff] %v74_v27 }
  0x2b   :  { %140 = shalt.err (!%p137_p9)
}
  0x2c   :  { %88 = dma.vmem_to_hbm [thread:$0]  %s86_s20, 256, %s184_s2, [#allocation4]  }
  0x2d   :  { %153 = dma.done.wait [#allocation4], 256  }
  0x2e   :  { %154 = vsyncadd [#allocation4], 4294967040 }
  0x2f   :  { %92 = vsyncpa [#allocation3], 1 }
  0x30   :  { %93 = vsyncpa [#allocation4], 1 }
  0x31   :  { %94 = vsyncpa [#allocation5], 1 }

</bundles_post_ra>
